<compile_context>
chip_gen: v7x
topology: tpu7x:2x2x1
jax: 0.10.0
libtpu: 0.0.40
codegen_flags: <defaults>
</compile_context>

<pallas_src>
import jax
import jax.numpy as jnp
from jax.experimental import pallas as pl
from jax.experimental.pallas import tpu as pltpu

BN_EPS = 1e-5


def _round_up(n, m):
    return (n + m - 1) // m * m


def _cmt_kernel(bid_ref, x_ref, w1_ref, b1_ref, w2_ref, b2_ref, out_ref):
    # bid_ref : SMEM (nb,) int32    branch ids (consumed only by the index_maps)
    # x_ref   : (TB, F)  f32        flattened input tile (cast to bf16 in-kernel)
    # w1_ref  : (F, H)   bf16       BN-folded t1 weight, pre-transposed
    # b1_ref  : (1, H)   f32        BN-folded t1 bias
    # w2_ref  : (H, D)   bf16       t2 weight, pre-transposed
    # b2_ref  : (1, D)   f32        t2 bias
    # out_ref : (TB, D)  f32/bf16
    del bid_ref

    # Cast activations to bf16 in-kernel (VPU cast hides under the tile DMA); the wrapper
    # streams f32 from HBM exactly once.
    x = x_ref[...].astype(w1_ref.dtype)

    # t1 + folded BatchNorm (MXU, bf16 inputs, f32 accumulate); bias/tanh in f32.
    y = jnp.dot(x, w1_ref[...], preferred_element_type=jnp.float32)
    y = jnp.tanh(y + b1_ref[...])

    # t2 (MXU, bf16 inputs, f32 accumulate)
    out = jnp.dot(y.astype(w2_ref.dtype), w2_ref[...],
                  preferred_element_type=jnp.float32)
    out_ref[...] = (out + b2_ref[...]).astype(out_ref.dtype)


def _fold_branch(p, weight_dtype):
    """Fold eval-mode BatchNorm1d into Linear1; transpose + cast weights (done once)."""
    scale = p["bn_gamma"] * jax.lax.rsqrt(p["bn_var"].astype(jnp.float32) + BN_EPS)
    w1_t = (p["w1"].astype(jnp.float32) * scale[:, None]).T.astype(weight_dtype)  # (F, H)
    b1 = ((p["b1"] - p["bn_mean"]) * scale + p["bn_beta"]).astype(jnp.float32)    # (H,)
    w2_t = p["w2"].astype(weight_dtype).T                                          # (H, D)
    b2 = p["b2"].astype(jnp.float32)                                               # (D,)
    return w1_t, b1, w2_t, b2


def prepare_cmt_params(params_sk, params_im, weight_dtype=jnp.bfloat16, training=False):
    """One-time parameter prep: fold BN, transpose, cast to bf16, stack the two branches."""
    if training:
        # TODO(synk): train-mode BatchNorm (batch stats + running-stat updates) unsupported.
        raise NotImplementedError("CMT Pallas kernel supports eval-mode BatchNorm only")
    w1s, b1s, w2s, b2s = _fold_branch(params_sk, weight_dtype)
    w1i, b1i, w2i, b2i = _fold_branch(params_im, weight_dtype)
    return {
        "w1": jnp.stack([w1s, w1i]),                 # (2, F, H) bf16
        "b1": jnp.stack([b1s[None], b1i[None]]),     # (2, 1, H) f32
        "w2": jnp.stack([w2s, w2i]),                 # (2, H, D) bf16
        "b2": jnp.stack([b2s[None], b2i[None]]),     # (2, 1, D) f32
    }


def _pick_batch_tile(B):
    """Batch tile: big (>=512, up to 1024) for HBM streaming at large batches, but capped so
    a single-branch call still exposes >=2 batch tiles whenever possible (v7x 2nd core)."""
    if B <= 8:
        return 8
    if B > 2048:
        return 1024
    return _round_up(B, 16) // 2  # exactly 2 tiles; multiple of 8 (f32 activations)


def _flatten_pad(x, tb):
    """NCHW -> (Bp, F) f32, batch padded to a multiple of the batch tile. No dtype cast here;
    the bf16 cast happens in-kernel so the input is streamed from HBM once."""
    B = x.shape[0]
    x_flat = x.reshape(B, -1).astype(jnp.float32)  # == torch x.view(B, -1) on NCHW
    Bp = _round_up(B, tb)
    if Bp != B:
        x_flat = jnp.pad(x_flat, ((0, Bp - B), (0, 0)))
    return x_flat, B


def _run_cmt(prepared, x_stack, branch_ids, tb, out_dtype):
    """x_stack: (nb, Bp, F) f32; branch_ids: (nb,) int32 selecting the weight set per row."""
    nb, Bp, F = x_stack.shape
    w1, b1, w2, b2 = prepared["w1"], prepared["b1"], prepared["w2"], prepared["b2"]
    H, D = w1.shape[2], w2.shape[2]
    assert Bp % tb == 0

    grid_spec = pltpu.PrefetchScalarGridSpec(
        num_scalar_prefetch=1,
        grid=(nb, Bp // tb),  # nb leading so the fused call gives one branch per TC on v7x
        in_specs=[
            # activations: tiled over the (inner) batch grid axis
            pl.BlockSpec((None, tb, F), lambda b, i, bid: (b, i, 0)),
            # weights/biases: branch-selected via scalar prefetch; index depends only on the
            # outer axis, so they stay VMEM-resident across batch tiles
            pl.BlockSpec((None, F, H), lambda b, i, bid: (bid[b], 0, 0)),
            pl.BlockSpec((None, 1, H), lambda b, i, bid: (bid[b], 0, 0)),
            pl.BlockSpec((None, H, D), lambda b, i, bid: (bid[b], 0, 0)),
            pl.BlockSpec((None, 1, D), lambda b, i, bid: (bid[b], 0, 0)),
        ],
        out_specs=pl.BlockSpec((None, tb, D), lambda b, i, bid: (b, i, 0)),
    )
    return pl.pallas_call(
        _cmt_kernel,
        out_shape=jax.ShapeDtypeStruct((nb, Bp, D), out_dtype),
        grid_spec=grid_spec,
        compiler_params=pltpu.CompilerParams(
            dimension_semantics=("parallel", "parallel")),
    )(branch_ids, x_stack, w1, b1, w2, b2)


def cmt_forward(prepared, sk=None, im=None, out_dtype=jnp.float32):
    """Mirror of CMT.forward(sk=None, im=None) (default back_bone, eval-mode BN)."""
    if sk is not None:
        x, bid = sk, 0
    elif im is not None:
        x, bid = im, 1
    else:
        raise Exception("either sk or im should be provided")
    tb = _pick_batch_tile(x.shape[0])
    x_flat, B = _flatten_pad(x, tb)
    out = _run_cmt(prepared, x_flat[None], jnp.array([bid], jnp.int32), tb, out_dtype)
    return out[0, :B]


def cmt_forward_both(prepared, sk, im, out_dtype=jnp.float32):
    """Fused variant: both branches in a single pallas_call (nb=2 -> one branch per TC on
    v7x; amortizes launch/DMA overhead everywhere)."""
    assert sk.shape[0] == im.shape[0]
    tb = _pick_batch_tile(sk.shape[0])
    sk_flat, B = _flatten_pad(sk, tb)
    im_flat, _ = _flatten_pad(im, tb)
    out = _run_cmt(prepared, jnp.stack([sk_flat, im_flat]),
                   jnp.array([0, 1], jnp.int32), tb, out_dtype)
    return out[0, :B], out[1, :B]


def init_branch_params(key, in_features, h, d):
    """Deterministic stand-in for the torch Linear / BatchNorm1d parameter shapes."""
    ks = jax.random.split(key, 8)
    return {
        # nn.Linear(in_features, h): weight (h, in_features), bias (h,)
        "w1": jax.random.normal(ks[0], (h, in_features), jnp.float32) * 0.02,
        "b1": jax.random.normal(ks[1], (h,), jnp.float32) * 0.01,
        # nn.BatchNorm1d(h)
        "bn_gamma": 1.0 + 0.1 * jax.random.normal(ks[2], (h,), jnp.float32),
        "bn_beta": 0.1 * jax.random.normal(ks[3], (h,), jnp.float32),
        "bn_mean": 0.05 * jax.random.normal(ks[4], (h,), jnp.float32),
        "bn_var": jnp.abs(1.0 + 0.1 * jax.random.normal(ks[5], (h,), jnp.float32)),
        # nn.Linear(h, d): weight (d, h), bias (d,)
        "w2": jax.random.normal(ks[6], (d, h), jnp.float32) * 0.02,
        "b2": jax.random.normal(ks[7], (d,), jnp.float32) * 0.01,
    }


if __name__ == "__main__":
    # Small shapes consistent with the module: sz=16, h=128, d=128, batch=8.
    B, C, SZ = 8, 3, 16
    H, D = 128, 128
    F = C * SZ * SZ  # 768

    key = jax.random.PRNGKey(0)
    k_sk, k_im, k_x_sk, k_x_im, k_big = jax.random.split(key, 5)

    params_sk = init_branch_params(k_sk, F, H, D)
    params_im = init_branch_params(k_im, F, H, D)
    prepared = prepare_cmt_params(params_sk, params_im)  # one-time fold/transpose/cast

    sk = jax.random.normal(k_x_sk, (B, C, SZ, SZ), jnp.float32)  # NCHW
    im = jax.random.normal(k_x_im, (B, C, SZ, SZ), jnp.float32)  # NCHW

    out_sk = cmt_forward(prepared, sk=sk)
    out_im = cmt_forward(prepared, im=im)
    out_sk2, out_im2 = cmt_forward_both(prepared, sk, im)

    # Multi-tile / padded-batch path (2 batch tiles + padding) and bf16-output option.
    BIG = 40
    sk_big = jax.random.normal(k_big, (BIG, C, SZ, SZ), jnp.float32)
    out_big = cmt_forward(prepared, sk=sk_big)
    out_big_bf16 = cmt_forward(prepared, sk=sk_big, out_dtype=jnp.bfloat16)

    jax.block_until_ready((out_sk, out_im, out_sk2, out_im2, out_big, out_big_bf16))

    assert out_sk.shape == (B, D) and out_im.shape == (B, D)
    assert out_big.shape == (BIG, D)
    assert out_big_bf16.dtype == jnp.bfloat16

    # Pure-JAX f32 reference of the original (unfolded) math.
    def ref(x, p):
        xf = x.reshape(x.shape[0], -1)
        y = xf @ p["w1"].T + p["b1"]
        y = (y - p["bn_mean"]) / jnp.sqrt(p["bn_var"] + BN_EPS) * p["bn_gamma"] + p["bn_beta"]
        y = jnp.tanh(y)
        return y @ p["w2"].T + p["b2"]

    # bf16 weights/activations with f32 accumulation: compare with ~1e-2 tolerance.
    assert jnp.allclose(out_sk, ref(sk, params_sk), atol=1e-2, rtol=1e-2)
    assert jnp.allclose(out_im, ref(im, params_im), atol=1e-2, rtol=1e-2)
    assert jnp.allclose(out_big, ref(sk_big, params_sk), atol=1e-2, rtol=1e-2)
    assert jnp.allclose(out_big_bf16.astype(jnp.float32), out_big, atol=2e-2, rtol=2e-2)
    # Fused path must match the single-branch path.
    assert jnp.allclose(out_sk2, out_sk, atol=1e-5)
    assert jnp.allclose(out_im2, out_im, atol=1e-5)

    print("KERNEL_OK")
</pallas_src>

<mosaic_0001>
module attributes {stable_mosaic.version = 11 : i64} {
  func.func @_cmt_kernel(%arg0: i32, %arg1: i32, %arg2: memref<1xi32, #tpu.memory_space<smem>>, %arg3: memref<1x8x768xf32, #tpu.memory_space<vmem>>, %arg4: memref<1x768x128xbf16, #tpu.memory_space<vmem>>, %arg5: memref<1x1x128xf32, #tpu.memory_space<vmem>>, %arg6: memref<1x128x128xbf16, #tpu.memory_space<vmem>>, %arg7: memref<1x1x128xf32, #tpu.memory_space<vmem>>, %arg8: memref<1x8x128xf32, #tpu.memory_space<vmem>>) attributes {dimension_semantics = [#tpu.dimension_semantics<parallel>, #tpu.dimension_semantics<parallel>], iteration_bounds = array<i64: 1, 1>, scalar_prefetch = 1 : i64, scratch_operands = 0 : i64, tpu.core_type = #tpu.core_type<tc>, window_params = [{transform_indices = @transform_0, window_bounds = array<i64: 1, 8, 768>}, {transform_indices = @transform_1, window_bounds = array<i64: 1, 768, 128>}, {transform_indices = @transform_2, window_bounds = array<i64: 1, 1, 128>}, {transform_indices = @transform_3, window_bounds = array<i64: 1, 128, 128>}, {transform_indices = @transform_4, window_bounds = array<i64: 1, 1, 128>}, {transform_indices = @transform_5, window_bounds = array<i64: 1, 8, 128>}]} {
    %c0 = arith.constant 0 : index
    %c0_0 = arith.constant 0 : index
    %c0_1 = arith.constant 0 : index
    %0 = vector.load %arg3[%c0, %c0_0, %c0_1] : memref<1x8x768xf32, #tpu.memory_space<vmem>>, vector<1x8x768xf32>
    %1 = vector.shape_cast %0 : vector<1x8x768xf32> to vector<8x768xf32>
    %2 = arith.truncf %1 : vector<8x768xf32> to vector<8x768xbf16>
    %c0_2 = arith.constant 0 : index
    %c0_3 = arith.constant 0 : index
    %c0_4 = arith.constant 0 : index
    %3 = vector.load %arg4[%c0_2, %c0_3, %c0_4] : memref<1x768x128xbf16, #tpu.memory_space<vmem>>, vector<1x768x128xbf16>
    %4 = vector.shape_cast %3 : vector<1x768x128xbf16> to vector<768x128xbf16>
    %cst = arith.constant dense<0.000000e+00> : vector<8x128xf32>
    %5 = tpu.matmul %2, %4, %cst {dimension_numbers = #tpu.dot_dimension_numbers<[1], [0], [0], [1], [0, 0, 1, 1], [], []>} : vector<8x768xbf16>, vector<768x128xbf16>, vector<8x128xf32> -> vector<8x128xf32>
    %c0_5 = arith.constant 0 : index
    %c0_6 = arith.constant 0 : index
    %c0_7 = arith.constant 0 : index
    %6 = vector.load %arg5[%c0_5, %c0_6, %c0_7] : memref<1x1x128xf32, #tpu.memory_space<vmem>>, vector<1x1x128xf32>
    %7 = vector.shape_cast %6 : vector<1x1x128xf32> to vector<1x128xf32>
    %8 = vector.broadcast %7 : vector<1x128xf32> to vector<8x128xf32>
    %9 = arith.addf %5, %8 : vector<8x128xf32>
    %10 = math.tanh %9 : vector<8x128xf32>
    %11 = arith.truncf %10 : vector<8x128xf32> to vector<8x128xbf16>
    %c0_8 = arith.constant 0 : index
    %c0_9 = arith.constant 0 : index
    %c0_10 = arith.constant 0 : index
    %12 = vector.load %arg6[%c0_8, %c0_9, %c0_10] : memref<1x128x128xbf16, #tpu.memory_space<vmem>>, vector<1x128x128xbf16>
    %13 = vector.shape_cast %12 : vector<1x128x128xbf16> to vector<128x128xbf16>
    %cst_11 = arith.constant dense<0.000000e+00> : vector<8x128xf32>
    %14 = tpu.matmul %11, %13, %cst_11 {dimension_numbers = #tpu.dot_dimension_numbers<[1], [0], [0], [1], [0, 0, 1, 1], [], []>} : vector<8x128xbf16>, vector<128x128xbf16>, vector<8x128xf32> -> vector<8x128xf32>
    %c0_12 = arith.constant 0 : index
    %c0_13 = arith.constant 0 : index
    %c0_14 = arith.constant 0 : index
    %15 = vector.load %arg7[%c0_12, %c0_13, %c0_14] : memref<1x1x128xf32, #tpu.memory_space<vmem>>, vector<1x1x128xf32>
    %16 = vector.shape_cast %15 : vector<1x1x128xf32> to vector<1x128xf32>
    %17 = vector.broadcast %16 : vector<1x128xf32> to vector<8x128xf32>
    %18 = arith.addf %14, %17 : vector<8x128xf32>
    %c0_15 = arith.constant 0 : index
    %c0_16 = arith.constant 0 : index
    %c0_17 = arith.constant 0 : index
    %19 = vector.load %arg8[%c0_15, %c0_16, %c0_17] : memref<1x8x128xf32, #tpu.memory_space<vmem>>, vector<1x8x128xf32>
    %20 = vector.shape_cast %19 : vector<1x8x128xf32> to vector<8x128xf32>
    %21 = vector.shape_cast %18 : vector<8x128xf32> to vector<1x8x128xf32>
    tpu.vector_store %arg8[%c0_15, %c0_16, %c0_17], %21 {strides = array<i32>} : memref<1x8x128xf32, #tpu.memory_space<vmem>>, vector<1x8x128xf32>,
    return
  }
  func.func @transform_0(%arg0: i32, %arg1: i32, %arg2: memref<1xi32, #tpu.memory_space<smem>>) -> (i32, i32, i32) {
    %c0_i32 = arith.constant 0 : i32
    %c0_i32_0 = arith.constant 0 : i32
    return %arg0, %arg1, %c0_i32 : i32, i32, i32
  }
  func.func @transform_1(%arg0: i32, %arg1: i32, %arg2: memref<1xi32, #tpu.memory_space<smem>>) -> (i32, i32, i32) {
    %0 = arith.index_cast %arg0 : i32 to index
    %1 = memref.load %arg2[%0] : memref<1xi32, #tpu.memory_space<smem>>
    %c0_i32 = arith.constant 0 : i32
    %c0_i32_0 = arith.constant 0 : i32
    %c0_i32_1 = arith.constant 0 : i32
    return %1, %c0_i32, %c0_i32_0 : i32, i32, i32
  }
  func.func @transform_2(%arg0: i32, %arg1: i32, %arg2: memref<1xi32, #tpu.memory_space<smem>>) -> (i32, i32, i32) {
    %0 = arith.index_cast %arg0 : i32 to index
    %1 = memref.load %arg2[%0] : memref<1xi32, #tpu.memory_space<smem>>
    %c0_i32 = arith.constant 0 : i32
    %c0_i32_0 = arith.constant 0 : i32
    %c0_i32_1 = arith.constant 0 : i32
    return %1, %c0_i32, %c0_i32_0 : i32, i32, i32
  }
  func.func @transform_3(%arg0: i32, %arg1: i32, %arg2: memref<1xi32, #tpu.memory_space<smem>>) -> (i32, i32, i32) {
    %0 = arith.index_cast %arg0 : i32 to index
    %1 = memref.load %arg2[%0] : memref<1xi32, #tpu.memory_space<smem>>
    %c0_i32 = arith.constant 0 : i32
    %c0_i32_0 = arith.constant 0 : i32
    %c0_i32_1 = arith.constant 0 : i32
    return %1, %c0_i32, %c0_i32_0 : i32, i32, i32
  }
  func.func @transform_4(%arg0: i32, %arg1: i32, %arg2: memref<1xi32, #tpu.memory_space<smem>>) -> (i32, i32, i32) {
    %0 = arith.index_cast %arg0 : i32 to index
    %1 = memref.load %arg2[%0] : memref<1xi32, #tpu.memory_space<smem>>
    %c0_i32 = arith.constant 0 : i32
    %c0_i32_0 = arith.constant 0 : i32
    %c0_i32_1 = arith.constant 0 : i32
    return %1, %c0_i32, %c0_i32_0 : i32, i32, i32
  }
  func.func @transform_5(%arg0: i32, %arg1: i32, %arg2: memref<1xi32, #tpu.memory_space<smem>>) -> (i32, i32, i32) {
    %c0_i32 = arith.constant 0 : i32
    %c0_i32_0 = arith.constant 0 : i32
    return %arg0, %arg1, %c0_i32 : i32, i32, i32
  }
}

</mosaic_0001>

<bundles_post_ra>
// kernel: tpu_custom_call.1
= control target key start
LH: loop header
LB: loop body
LE: loop exit
PB: predicated region body
PF: predicated region fallthrough
CT: control target
= control target key end

     0   :  { %12 = vsyncpa [#allocation5], 0  ;;  %s1195_s0 = inlined_call_operand.<no memory space> [shape: s32[1], index: 0, kind: input, shape index: {}]   ;;  %s1196_s1 = inlined_call_operand.hbm [shape: f32[1,8,768], index: 1, kind: input, shape index: {}]   ;;  %s1197_s2 = inlined_call_operand.hbm [shape: bf16[2,768,128], index: 2, kind: input, shape index: {}]   ;;  %s1198_s3 = inlined_call_operand.vmem [shape: f32[2,1,128], index: 3, kind: input, shape index: {}]   ;;  %s1199_s4 = inlined_call_operand.hbm [shape: bf16[2,128,128], index: 4, kind: input, shape index: {}]   ;;  %s1200_s5 = inlined_call_operand.vmem [shape: f32[2,1,128], index: 5, kind: input, shape index: {}]   ;;  %s1201_s6 = inlined_call_operand.hbm [shape: f32[1,8,128], index: 6, kind: output, shape index: {}]  }
   0x1   :  { %13 = vsyncpa [#allocation8], 0  ;;  %s921_s23 = smul.u32 6144, %s1195_s0 }
   0x2   :  { %14 = vsyncpa [#allocation6], 0  ;;  %s1086_s24 = smov [#allocation7]   ;;  %s990_s8 = scalar_lea.hbm %s1197_s2, 12288 }
   0x3   :  { %s34_s25 = sshll.u32 %s1086_s24, 4  ;;  %s33_s28 = scalar_lea.hbm %s1197_s2, %s921_s23  ;;  %s35_s25 = int_to_ptr.vmem [resolvable:$true] %s34_s25 }
   0x4   :  { %s988_s29 = scalar_lea.hbm %s33_s28, 6144  ;;  %p991_p1 = scmp.lt.u32.totalorder %s33_s28, %s1197_s2 }
   0x5   :  { %p989_p0 = scmp.ne.s32.totalorder %s33_s28, %s988_s29  ;;  %p992_p2 = scmp.lt.u32.totalorder %s990_s8, %s988_s29 }
   0x6   :  { %p994_p4 = scmp.lt.u32.totalorder %s988_s29, %s33_s28 }
   0x7   :  { %p993_p3 = por %p992_p2, %p991_p1 }
   0x9   :  { %p995_p5 = por %p994_p4, %p993_p3 }
   0xb   :  { %p996_p6 = pnand %p995_p5, %p989_p0 }
   0xd   :  { %999 = shalt.err (!%p996_p6)
}
   0xe   :  { %s1000_s11 = scalar_lea.vmem %s35_s25, 6144  ;;  %p1005_p8 = scmp.lt.s32.totalorder %s35_s25, %s35_s25 }
   0xf   :  { %p1001_p7 = scmp.ne.s32.totalorder %s35_s25, %s1000_s11  ;;  %p1006_p9 = scmp.lt.s32.totalorder %s1000_s11, %s1000_s11 }
  0x11   :  { %p1007_p10 = por %p1006_p9, %p1005_p8 }
  0x13   :  { %p1008_p11 = pnand %p1007_p10, %p1001_p7 }
  0x15   :  { %1011 = shalt.err (!%p1008_p11)
}
  0x16   :  { %s1087_s12 = smov 64   ;;  %s1088_s13 = smov 4  }
  0x17   :  { %40 = dma.hbm_to_vmem [thread:$0]  %s33_s28, 6144, %s35_s25, [#allocation8], %s1087_s12, %s1087_s12, %s1088_s13  }
  0x18   :  { %s1089_s2 = smov [#allocation4]   ;;  %s825_s17 = sshll.u32 %s1195_s0, 10 }
  0x19   :  { %s21_s14 = sshll.u32 %s1089_s2, 4  ;;  %s1012_s20 = scalar_lea.hbm %s1196_s1, 768  ;;  %s22_s14 = int_to_ptr.vmem [resolvable:$true] %s21_s14 }
  0x1a   :  { %p1013_p12 = scmp.ne.s32.totalorder %s1196_s1, %s1012_s20  ;;  %p1016_p13 = scmp.lt.u32.totalorder %s1012_s20, %s1196_s1 }
  0x1c   :  { %p1018_p0 = pnand %p1016_p13, %p1013_p12 }
  0x1e   :  { %1021 = shalt.err (!%p1018_p0)
}
  0x1f   :  { %s1022_s25 = scalar_lea.vmem %s22_s14, 768  ;;  %p1027_p2 = scmp.lt.s32.totalorder %s22_s14, %s22_s14 }
  0x20   :  { %p1023_p1 = scmp.ne.s32.totalorder %s22_s14, %s1022_s25  ;;  %p1028_p3 = scmp.lt.s32.totalorder %s1022_s25, %s1022_s25 }
  0x22   :  { %p1029_p4 = por %p1028_p3, %p1027_p2 }
  0x24   :  { %p1030_p5 = pnand %p1029_p4, %p1023_p1 }
  0x26   :  { %1033 = shalt.err (!%p1030_p5)
}
  0x27   :  { %24 = dma.hbm_to_vmem [thread:$0]  %s1196_s1, 768, %s22_s14, [#allocation5]  }
  0x28   :  { %s56_s30 = scalar_lea.hbm %s1199_s4, %s825_s17  ;;  %s1090_s7 = smov [#allocation9]  }
  0x29   :  { %s57_s8 = sshll.u32 %s1090_s7, 4  ;;  %s1034_s9 = scalar_lea.hbm %s56_s30, 1024  ;;  %s58_s8 = int_to_ptr.vmem [resolvable:$true] %s57_s8 }
  0x2a   :  { %p1035_p6 = scmp.ne.s32.totalorder %s56_s30, %s1034_s9  ;;  %s1036_s2 = scalar_lea.hbm %s1199_s4, 2048 }
  0x2b   :  { %p1037_p7 = scmp.lt.u32.totalorder %s56_s30, %s1199_s4  ;;  %p1038_p8 = scmp.lt.u32.totalorder %s1036_s2, %s1034_s9 }
  0x2c   :  { %p1040_p10 = scmp.lt.u32.totalorder %s1034_s9, %s56_s30 }
  0x2d   :  { %p1039_p9 = por %p1038_p8, %p1037_p7 }
  0x2f   :  { %p1041_p11 = por %p1040_p10, %p1039_p9 }
  0x31   :  { %p1042_p12 = pnand %p1041_p11, %p1035_p6 }
  0x33   :  { %1045 = shalt.err (!%p1042_p12)
}
  0x34   :  { %s1046_s1 = scalar_lea.vmem %s58_s8, 1024  ;;  %p1051_p0 = scmp.lt.s32.totalorder %s58_s8, %s58_s8 }
  0x35   :  { %p1047_p13 = scmp.ne.s32.totalorder %s58_s8, %s1046_s1  ;;  %p1052_p1 = scmp.lt.s32.totalorder %s1046_s1, %s1046_s1 }
  0x37   :  { %p1053_p2 = por %p1052_p1, %p1051_p0 }
  0x39   :  { %p1054_p3 = pnand %p1053_p2, %p1047_p13 }
  0x3b   :  { %1057 = shalt.err (!%p1054_p3)
}
  0x3c   :  { %63 = dma.hbm_to_vmem [thread:$0]  %s56_s30, 1024, %s58_s8, [#allocation8], %s1087_s12, %s1087_s12, %s1088_s13  }
  0x3d   :  { %1080 = dma.done.wait [#allocation5], 768  }
  0x3e   :  { %1081 = vsyncadd [#allocation5], 4294966528 }
  0x3f   :  { %1082 = dma.done.wait [#allocation8], 7168  }
  0x40   :  { %1083 = vsyncadd [#allocation8], 4294960128  ;;  %v930_v0 = vld [vmem:[#allocation7 + $0x40] sm:$0xff]   ;;  %v934_v4 = vld [vmem:[#allocation7 + $0x48] sm:$0xff]   ;;  %v1091_v61 = vmov 0.0   ;;  %vm1092_vm0 = vmmov 0  }
  0x41   :  { %v931_v1 = vld [vmem:[#allocation7] sm:$0xff]   ;;  %826 = vmatprep.subr.bf16.mxu0 %v930_v0  ;;  %v935_v5 = vld [vmem:[#allocation7 + $0x8] sm:$0xff]   ;;  %v938_v8 = vld [vmem:[#allocation7 + $0x50] sm:$0xff]   ;;  %p90_p4 = scmp.lt.s32.totalorder %s1195_s0, 1  ;;  %s1093_s22 = smov [#allocation10]  }
  0x42   :  { %v932_v2 = vld [vmem:[#allocation7 + $0xc0] sm:$0xff]   ;;  %827 = vmatpush3.bf16.msra.mxu0 %v931_v1  ;;  %v936_v6 = vld [vmem:[#allocation7 + $0xc8] sm:$0xff]   ;;  %v939_v9 = vld [vmem:[#allocation7 + $0x10] sm:$0xff]   ;;  %s744_s23 = sshll.u32 %s1093_s22, 4  ;;  %s745_s23 = int_to_ptr.vmem [resolvable:$true] %s744_s23 }
  0x43   :  { %v933_v3 = vld [vmem:[#allocation7 + $0x80] sm:$0xff]   ;;  %848 = vmatprep.subr.bf16.mxu1 %v932_v2  ;;  %828 = vmatprep.subr.bf16.mxu0 %v934_v4  ;;  %v937_v7 = vld [vmem:[#allocation7 + $0x88] sm:$0xff]   ;;  %v940_v10 = vld [vmem:[#allocation7 + $0xd0] sm:$0xff]   ;;  %s1203_s0 = smov (!%p90_p4, %s1195_s0), 1  ;;  %s1058_s24 = scalar_lea.vmem %s745_s23, 128 }
  0x44   :  { %849 = vmatpush3.bf16.msra.mxu1 %v933_v3  ;;  %v941_v11 = vld [vmem:[#allocation7 + $0x90] sm:$0xff]   ;;  %v942_v12 = vld [vmem:[#allocation7 + $0x58] sm:$0xff]   ;;  %v946_v16 = vld [vmem:[#allocation7 + $0x60] sm:$0xff]   ;;  %s92_s19 = scalar_lea.vmem %s1198_s3, %s1203_s0  ;;  %s98_s21 = scalar_lea.vmem %s1200_s5, %s1203_s0 }
  0x45   :  { %850 = vmatprep.subr.bf16.mxu1 %v936_v6  ;;  %v943_v13 = vld [vmem:[#allocation7 + $0x18] sm:$0xff]   ;;  %v947_v17 = vld [vmem:[#allocation7 + $0x20] sm:$0xff]   ;;  %v950_v20 = vld [vmem:[#allocation7 + $0x68] sm:$0xff]   ;;  %p1059_p5 = scmp.ne.s32.totalorder %s745_s23, %s1058_s24  ;;  %p1063_p6 = scmp.lt.s32.totalorder %s745_s23, %s745_s23 }
  0x46   :  { %829 = vmatpush3.bf16.msra.mxu0 %v935_v5  ;;  %v944_v14 = vld [vmem:[#allocation7 + $0xd8] sm:$0xff]   ;;  %v948_v18 = vld [vmem:[#allocation7 + $0xe0] sm:$0xff]   ;;  %v951_v21 = vld [vmem:[#allocation7 + $0x28] sm:$0xff]   ;;  %p1064_p7 = scmp.lt.s32.totalorder %s1058_s24, %s1058_s24 }
  0x47   :  { %830 = vmatprep.subr.bf16.mxu0 %v938_v8  ;;  %v945_v15 = vld [vmem:[#allocation7 + $0x98] sm:$0xff]   ;;  %v949_v19 = vld [vmem:[#allocation7 + $0xa0] sm:$0xff]   ;;  %v952_v22 = vld [vmem:[#allocation7 + $0xe8] sm:$0xff]  }
  0x48   :  { %851 = vmatpush3.bf16.msra.mxu1 %v937_v7  ;;  %v953_v23 = vld [vmem:[#allocation7 + $0xa8] sm:$0xff]   ;;  %v954_v24 = vld [vmem:[#allocation7 + $0x70] sm:$0xff]   ;;  %v958_v28 = vld [vmem:[#allocation7 + $0x78] sm:$0xff]   ;;  %p1065_p8 = por %p1064_p7, %p1063_p6 }
  0x49   :  { %852 = vmatprep.subr.bf16.mxu1 %v940_v10  ;;  %v955_v25 = vld [vmem:[#allocation7 + $0x30] sm:$0xff]   ;;  %v959_v29 = vld [vmem:[#allocation7 + $0x38] sm:$0xff]   ;;  %v962_v36 = vld [vmem:[#allocation7 + $0x140] sm:$0xff]  }
  0x4a   :  { %831 = vmatpush3.bf16.msra.mxu0 %v939_v9  ;;  %v956_v26 = vld [vmem:[#allocation7 + $0xf0] sm:$0xff]   ;;  %v960_v30 = vld [vmem:[#allocation7 + $0xf8] sm:$0xff]   ;;  %v104_v37 = vld [vmem:[#allocation4 + $0x18] sm:$0xff]  ;;  %p1066_p9 = pnand %p1065_p8, %p1059_p5 }
  0x4b   :  { %832 = vmatprep.subr.bf16.mxu0 %v942_v12  ;;  %v957_v27 = vld [vmem:[#allocation7 + $0xb0] sm:$0xff]   ;;  %v102_v31 = vld [vmem:[#allocation4 + $0x8] sm:$0xff]  ;;  %v110_v38 = vpack.c.bf16 %v104_v37, %v104_v37  ;;  %v963_v39 = vld [vmem:[#allocation7 + $0x100] sm:$0xff]  }
  0x4c   :  { %853 = vmatpush3.bf16.msra.mxu1 %v941_v11  ;;  %v108_v32 = vpack.c.bf16 %v102_v31, %v102_v31  ;;  %v961_v33 = vld [vmem:[#allocation7 + $0xb8] sm:$0xff]   ;;  %v101_v34 = vld [vmem:[#allocation4] sm:$0xff]  ;;  %v103_v40 = vld [vmem:[#allocation4 + $0x10] sm:$0xff] }
  0x4d   :  { %854 = vmatprep.subr.bf16.mxu1 %v944_v14  ;;  %v107_v35 = vpack.c.bf16 %v101_v34, %v101_v34  ;;  %576 = vmatprep.mubr.bf16.mxu1 %v110_v38  ;;  %v109_v41 = vpack.c.bf16 %v103_v40, %v103_v40  ;;  %v964_v42 = vld [vmem:[#allocation7 + $0x148] sm:$0xff]   ;;  %v966_v44 = vld [vmem:[#allocation7 + $0x150] sm:$0xff]   ;;  %v968_v46 = vld [vmem:[#allocation7 + $0x158] sm:$0xff]  }
  0x4e   :  { %833 = vmatpush3.bf16.msra.mxu0 %v943_v13  ;;  %536 = vmatprep.mubr.bf16.mxu0 %v108_v32  ;;  %v965_v43 = vld [vmem:[#allocation7 + $0x108] sm:$0xff]   ;;  %v967_v45 = vld [vmem:[#allocation7 + $0x110] sm:$0xff]   ;;  %v969_v47 = vld [vmem:[#allocation7 + $0x118] sm:$0xff]  }
  0x4f   :  { %834 = vmatprep.subr.bf16.mxu0 %v946_v16  ;;  %v970_v48 = vld [vmem:[#allocation7 + $0x160] sm:$0xff]   ;;  %v972_v50 = vld [vmem:[#allocation7 + $0x168] sm:$0xff]   ;;  %v106_v51 = vld [vmem:[#allocation4 + $0x28] sm:$0xff] }
  0x50   :  { %855 = vmatpush3.bf16.msra.mxu1 %v945_v15  ;;  %v971_v49 = vld [vmem:[#allocation7 + $0x120] sm:$0xff]   ;;  %v973_v52 = vld [vmem:[#allocation7 + $0x128] sm:$0xff]   ;;  %v112_v53 = vpack.c.bf16 %v106_v51, %v106_v51  ;;  %v974_v54 = vld [vmem:[#allocation7 + $0x170] sm:$0xff]  }
  0x51   :  { %856 = vmatprep.subr.bf16.mxu1 %v948_v18  ;;  %v975_v55 = vld [vmem:[#allocation7 + $0x130] sm:$0xff]   ;;  %v976_v56 = vld [vmem:[#allocation7 + $0x178] sm:$0xff]   ;;  %v978_v60 = vld [vmem:[#allocation9] sm:$0xff]  }
  0x52   :  { %835 = vmatpush3.bf16.msra.mxu0 %v947_v17  ;;  %v977_v57 = vld [vmem:[#allocation7 + $0x138] sm:$0xff]   ;;  %v105_v58 = vld [vmem:[#allocation4 + $0x20] sm:$0xff]  ;;  %v979_v62 = vld [vmem:[#allocation9 + $0x8] sm:$0xff]  }
  0x53   :  { %836 = vmatprep.subr.bf16.mxu0 %v950_v20  ;;  %v111_v59 = vpack.c.bf16 %v105_v58, %v105_v58  ;;  %v980_v63 = vld [vmem:[#allocation9 + $0x10] sm:$0xff]   ;;  %v981_v0 = vld [vmem:[#allocation9 + $0x18] sm:$0xff]   ;;  %v982_v1 = vld [vmem:[#allocation9 + $0x20] sm:$0xff]  }
  0x54   :  { %857 = vmatpush3.bf16.msra.mxu1 %v949_v19  ;;  %v983_v2 = vld [vmem:[#allocation9 + $0x28] sm:$0xff]   ;;  %v984_v3 = vld [vmem:[#allocation9 + $0x30] sm:$0xff]   ;;  %v985_v4 = vld [vmem:[#allocation9 + $0x38] sm:$0xff]  }
  0x55   :  { %858 = vmatprep.subr.bf16.mxu1 %v952_v22  ;;  %v767_v6 = vld [vmem:[%s92_s19] ss:$0 sm:$0xff] }
  0x56   :  { %837 = vmatpush3.bf16.msra.mxu0 %v951_v21 }
  0x57   :  { %838 = vmatprep.subr.bf16.mxu0 %v954_v24 }
  0x58   :  { %859 = vmatpush3.bf16.msra.mxu1 %v953_v23 }
  0x59   :  { %860 = vmatprep.subr.bf16.mxu1 %v956_v26  ;;  %v816_v26 = vld [vmem:[%s98_s21] ss:$0 sm:$0xff] }
  0x5a   :  { %839 = vmatpush3.bf16.msra.mxu0 %v955_v25 }
  0x5b   :  { %840 = vmatprep.subr.bf16.mxu0 %v958_v28 }
  0x5c   :  { %861 = vmatpush3.bf16.msra.mxu1 %v957_v27 }
  0x5d   :  { %862 = vmatprep.subr.bf16.mxu1 %v960_v30 }
  0x5e   :  { %841 = vmatpush3.bf16.msra.mxu0 %v959_v29 }
  0x5f   :  { %870 = vmatprep.subr.bf16.mxu0 %v962_v36 }
  0x60   :  { %863 = vmatpush3.bf16.msra.mxu1 %v961_v33 }
  0x61   :  { %537 = vmatmul.mubr.bf16.vlgmr.msra.gmra.mrb[0].mxu0 %v107_v35  ;;  %901 = vmatprep.subr.bf16.mxu1 %v1091_v61 }
  0x62   :  { %871 = vmatpush3.bf16.msra.mxu0 %v963_v39  ;;  %616 = vmatprep.mubr.bf16.mxu0 %v112_v53 }
  0x63   :  { %577 = vmatmul.mubr.bf16.vlgmr.msra.gmra.mrb[0].mxu1 %v109_v41  ;;  %872 = vmatprep.subr.bf16.mxu0 %v964_v42 }
  0x64   :  { %902 = vmatpush3.bf16.msra.mxu1 %v978_v60  ;;  %917 = vmatprep.mubr.msk.bf16.mxu1 %vm1092_vm0, %v1091_v61 }
  0x65   :  { %903 = vmatprep.subr.bf16.mxu1 %v1091_v61 }
  0x66   :  { %873 = vmatpush3.bf16.msra.mxu0 %v965_v43 }
  0x67   :  { %874 = vmatprep.subr.bf16.mxu0 %v966_v44 }
  0x68   :  { %904 = vmatpush3.bf16.msra.mxu1 %v979_v62 }
  0x69   :  { %905 = vmatprep.subr.bf16.mxu1 %v1091_v61 }
  0x6a   :  { %875 = vmatpush3.bf16.msra.mxu0 %v967_v45 }
  0x6b   :  { %876 = vmatprep.subr.bf16.mxu0 %v968_v46 }
  0x6c   :  { %906 = vmatpush3.bf16.msra.mxu1 %v980_v63 }
  0x6d   :  { %907 = vmatprep.subr.bf16.mxu1 %v1091_v61 }
  0x6e   :  { %877 = vmatpush3.bf16.msra.mxu0 %v969_v47 }
  0x6f   :  { %878 = vmatprep.subr.bf16.mxu0 %v970_v48 }
  0x70   :  { %908 = vmatpush3.bf16.msra.mxu1 %v981_v0 }
  0x71   :  { %909 = vmatprep.subr.bf16.mxu1 %v1091_v61 }
  0x72   :  { %879 = vmatpush3.bf16.msra.mxu0 %v971_v49 }
  0x73   :  { %880 = vmatprep.subr.bf16.mxu0 %v972_v50 }
  0x74   :  { %910 = vmatpush3.bf16.msra.mxu1 %v982_v1 }
  0x75   :  { %911 = vmatprep.subr.bf16.mxu1 %v1091_v61 }
  0x76   :  { %881 = vmatpush3.bf16.msra.mxu0 %v973_v52 }
  0x77   :  { %882 = vmatprep.subr.bf16.mxu0 %v974_v54 }
  0x78   :  { %912 = vmatpush3.bf16.msra.mxu1 %v983_v2 }
  0x79   :  { %913 = vmatprep.subr.bf16.mxu1 %v1091_v61 }
  0x7a   :  { %883 = vmatpush3.bf16.msra.mxu0 %v975_v55 }
  0x7b   :  { %884 = vmatprep.subr.bf16.mxu0 %v976_v56 }
  0x7c   :  { %914 = vmatpush3.bf16.msra.mxu1 %v984_v3 }
  0x7d   :  { %915 = vmatprep.subr.bf16.mxu1 %v1091_v61 }
  0x7e   :  { %885 = vmatpush3.bf16.msra.mxu0 %v977_v57 }
  0x80   :  { %916 = vmatpush3.bf16.msra.mxu1 %v985_v4 }
  0x81   :  { %617 = vmatmul.mubr.bf16.vlgmr.msra.gmra.mrb[4].mxu0 %v111_v59 }
 0x134   :  { %v842_v5 = vpop.f32.mrb[0].mxu0 }
 0x135   :  { %v843_v7 = vpop.f32.mrb[1].mxu0 }
 0x136   :  { %v844_v8 = vadd.f32 %v843_v7, %v842_v5  ;;  %v845_v9 = vpop.f32.mrb[2].mxu0  ;;  %v864_v10 = vpop.f32.mrb[0].mxu1 }
 0x137   :  { %v846_v11 = vpop.f32.mrb[3].mxu0  ;;  %v865_v13 = vpop.f32.mrb[1].mxu1 }
 0x138   :  { %v539_v12 = vadd.f32 %v844_v8, %v767_v6  ;;  %v866_v14 = vadd.f32 %v865_v13, %v864_v10  ;;  %v867_v15 = vpop.f32.mrb[2].mxu1 }
 0x139   :  { %v868_v16 = vpop.f32.mrb[3].mxu1 }
 0x13a   :  { %v579_v17 = vadd.f32 %v866_v14, %v539_v12 }
 0x154   :  { %v886_v18 = vpop.f32.mrb[4].mxu0 }
 0x155   :  { %v887_v19 = vpop.f32.mrb[5].mxu0 }
 0x156   :  { %v888_v20 = vadd.f32 %v887_v19, %v886_v18  ;;  %v889_v21 = vpop.f32.mrb[6].mxu0 }
 0x157   :  { %v890_v22 = vpop.f32.mrb[7].mxu0 }
 0x158   :  { %v619_v23 = vadd.f32 %v888_v20, %v579_v17 }
 0x15a   :  { %986 = vtanh.f32 %v619_v23 }
 0x164   :  { %v987_v24 = vpop.eup %986 }
 0x165   :  { %v625_v25 = vpack.c.bf16 %v987_v24, %v987_v24 }
 0x167   :  { %918 = vmatmul.mubr.bf16.vlgmr.msra.gmra.mrb[4].mxu1 %v625_v25 }
 0x23a   :  { %v731_v27 = vpop.f32.mrb[4].mxu1 }
 0x23b   :  { %v732_v28 = vadd.f32 %v816_v26, %v731_v27  ;;  %v919_v29 = vpop.f32.mrb[5].mxu1 }
 0x23c   :  { %v734_v30 = vpop.f32.mrb[6].mxu1 }
 0x23d   :  { %737 = vst [vmem:[#allocation10] sm:$0xff] %v732_v28  ;;  %v920_v31 = vpop.f32.mrb[7].mxu1 }
 0x23e   :  { %1069 = shalt.err (!%p1066_p9)
}
 0x23f   :  { %s1070_s0 = scalar_lea.hbm %s1201_s6, 128 }
 0x240   :  { %p1071_p10 = scmp.ne.s32.totalorder %s1201_s6, %s1070_s0  ;;  %p1074_p11 = scmp.lt.u32.totalorder %s1070_s0, %s1201_s6 }
 0x242   :  { %p1076_p12 = pnand %p1074_p11, %p1071_p10 }
 0x244   :  { %1079 = shalt.err (!%p1076_p12)
}
 0x245   :  { %747 = dma.vmem_to_hbm [thread:$0]  %s745_s23, 128, %s1201_s6, [#allocation6]  }
 0x246   :  { %1084 = dma.done.wait [#allocation6], 128  }
 0x247   :  { %1085 = vsyncadd [#allocation6], 4294967168 }
 0x248   :  { %751 = vsyncpa [#allocation5], 1 }
 0x249   :  { %752 = vsyncpa [#allocation8], 1 }
 0x24a   :  { %753 = vsyncpa [#allocation6], 1 }

</bundles_post_ra>
